<compile_context>
chip_gen: v7x
topology: tpu7x:2x2x1
jax: 0.10.0
libtpu: 0.0.40
codegen_flags: <defaults>
</compile_context>

<pallas_src>
import functools

import jax
import jax.numpy as jnp
from jax.experimental import pallas as pl
from jax.experimental.pallas import tpu as pltpu

OUT_LANES = 128  # lane-dense padded head width (>= num_actions + 1)


def _round_up(n, m):
    return ((n + m - 1) // m) * m


def dueling_dqn_kernel(x_ref,
                       w1_ref, b1_ref,
                       wh1_ref, bh1_ref,
                       wh2_ref, bh2_ref,
                       out_ref):
    # SimpleBody: relu(x @ W1 + b1) -> (TB, 128), f32 accum.  x cast to bf16 in-kernel.
    x = x_ref[...].astype(jnp.bfloat16)
    h = jnp.dot(x, w1_ref[...], preferred_element_type=jnp.float32) + b1_ref[...]
    h = jnp.maximum(h, 0.0).astype(jnp.bfloat16)

    # Fused adv1|val1: relu(h @ [Wa1 | Wv1] + [ba1 | bv1]) -> (TB, 1024).
    g = jnp.dot(h, wh1_ref[...], preferred_element_type=jnp.float32) + bh1_ref[...]
    g = jnp.maximum(g, 0.0).astype(jnp.bfloat16)

    # Fused block-diagonal adv2|val2 head -> lane-dense (TB, 128):
    #   cols [0, A) = adv, col A = val, remaining cols = 0.
    y = jnp.dot(g, wh2_ref[...], preferred_element_type=jnp.float32) + bh2_ref[...]
    out_ref[...] = y.astype(out_ref.dtype)          # bf16 store: half the writeback


@functools.partial(jax.jit, static_argnames=("num_actions",))
def dueling_dqn_forward(x, fused_params, *, num_actions):
    w1, b1, wh1, bh1, wh2, bh2 = fused_params
    B, F = x.shape
    OUT = wh2.shape[1]  # OUT_LANES

    # Batch tiling policy (see header).  Weights stay VMEM-resident across tiles.
    if B <= 128:
        tile_b = _round_up(max(B, 8), 8)
        grid_n = 1
    elif B <= 2048:
        # Two grid steps so the "parallel" axis shards across both v7x TensorCores.
        tile_b = _round_up((B + 1) // 2, 8)
        grid_n = 2
    else:
        tile_b = 1024
        grid_n = (B + tile_b - 1) // tile_b
    b_pad = tile_b * grid_n

    if b_pad != B:
        x = jnp.pad(x, ((0, b_pad - B), (0, 0)))    # only when not tile-aligned

    weight_bytes = (w1.size + wh1.size + wh2.size) * 2 + (b1.size + bh1.size + bh2.size) * 4
    cost = pl.CostEstimate(
        flops=2 * b_pad * (F * 128 + 128 * 1024 + 1024 * OUT),
        transcendentals=0,
        bytes_accessed=b_pad * F * 4 + weight_bytes + b_pad * OUT * 2,
    )

    y = pl.pallas_call(
        dueling_dqn_kernel,
        out_shape=jax.ShapeDtypeStruct((b_pad, OUT), jnp.bfloat16),
        grid=(grid_n,),
        in_specs=[
            pl.BlockSpec((tile_b, F), lambda i: (i, 0)),   # x tiles pipeline
            pl.BlockSpec(w1.shape, lambda i: (0, 0)),      # weights: VMEM-resident
            pl.BlockSpec(b1.shape, lambda i: (0, 0)),
            pl.BlockSpec(wh1.shape, lambda i: (0, 0)),
            pl.BlockSpec(bh1.shape, lambda i: (0, 0)),
            pl.BlockSpec(wh2.shape, lambda i: (0, 0)),
            pl.BlockSpec(bh2.shape, lambda i: (0, 0)),
        ],
        out_specs=pl.BlockSpec((tile_b, OUT), lambda i: (i, 0)),
        compiler_params=pltpu.CompilerParams(
            dimension_semantics=("parallel",)),            # shards over v7x TCs
        cost_estimate=cost,
    )(x, w1, b1, wh1, bh1, wh2, bh2)

    y = y[:B]
    adv = y[:, :num_actions].astype(jnp.float32)
    val = y[:, num_actions:num_actions + 1].astype(jnp.float32)
    # PyTorch: val + adv - adv.mean()   (global scalar mean over the full (B, A) adv)
    return val + adv - jnp.mean(adv)


# ----------------------------- parameter plumbing -----------------------------

def init_linear(key, fan_in, fan_out):
    """PyTorch nn.Linear default init: U(-1/sqrt(fan_in), 1/sqrt(fan_in)).

    Weight returned as (fan_in, fan_out) (transposed vs torch's (out, in)),
    bias as (1, fan_out).
    """
    kw, kb = jax.random.split(key)
    bound = 1.0 / jnp.sqrt(jnp.float32(fan_in))
    w = jax.random.uniform(kw, (fan_in, fan_out), jnp.float32, -bound, bound)
    b = jax.random.uniform(kb, (1, fan_out), jnp.float32, -bound, bound)
    return w, b


def make_params(key, in_features, num_actions):
    k1, k2, k3, k4, k5 = jax.random.split(key, 5)
    w1, b1 = init_linear(k1, in_features, 128)    # SimpleBody.fc1
    aw1, ab1 = init_linear(k2, 128, 512)          # adv1
    aw2, ab2 = init_linear(k3, 512, num_actions)  # adv2
    vw1, vb1 = init_linear(k4, 128, 512)          # val1
    vw2, vb2 = init_linear(k5, 512, 1)            # val2
    return (w1, b1, aw1, ab1, aw2, ab2, vw1, vb1, vw2, vb2)


def fuse_params(params, num_actions):
    """Fuse adv/val streams and cast matmul weights to bf16 (biases stay f32)."""
    (w1, b1, aw1, ab1, aw2, ab2, vw1, vb1, vw2, vb2) = params
    A = num_actions
    assert A + 1 <= OUT_LANES, "num_actions must be <= OUT_LANES - 1"

    # Fused first head layer: [adv1 | val1] -> (128, 1024).
    wh1 = jnp.concatenate([aw1, vw1], axis=1)
    bh1 = jnp.concatenate([ab1, vb1], axis=1)

    # Fused block-diagonal second head layer -> (1024, 128), lane-dense output.
    wh2 = jnp.zeros((1024, OUT_LANES), jnp.float32)
    wh2 = wh2.at[:512, :A].set(aw2)               # adv2 uses adv-stream hidden
    wh2 = wh2.at[512:, A:A + 1].set(vw2)          # val2 uses val-stream hidden
    bh2 = jnp.zeros((1, OUT_LANES), jnp.float32)
    bh2 = bh2.at[0, :A].set(ab2[0])
    bh2 = bh2.at[0, A].set(vb2[0, 0])

    bf = jnp.bfloat16
    return (w1.astype(bf), b1,
            wh1.astype(bf), bh1,
            wh2.astype(bf), bh2)


def reference_forward_bf16(x, params):
    """Pure-JAX reference mirroring the kernel's bf16 matmuls / f32 accumulate /
    bf16 output store, using the ORIGINAL (unfused) weights — validates the fusion."""
    (w1, b1, aw1, ab1, aw2, ab2, vw1, vb1, vw2, vb2) = params
    bf, f32 = jnp.bfloat16, jnp.float32
    xb = x.astype(bf)
    h = jnp.maximum(jnp.dot(xb, w1.astype(bf), preferred_element_type=f32) + b1, 0.0).astype(bf)
    ah = jnp.maximum(jnp.dot(h, aw1.astype(bf), preferred_element_type=f32) + ab1, 0.0).astype(bf)
    adv = (jnp.dot(ah, aw2.astype(bf), preferred_element_type=f32) + ab2).astype(bf).astype(f32)
    vh = jnp.maximum(jnp.dot(h, vw1.astype(bf), preferred_element_type=f32) + vb1, 0.0).astype(bf)
    val = (jnp.dot(vh, vw2.astype(bf), preferred_element_type=f32) + vb2).astype(bf).astype(f32)
    return val + adv - jnp.mean(adv)


def reference_forward_f32(x, params):
    """Full-f32 reference matching the PyTorch module exactly (no bf16)."""
    (w1, b1, aw1, ab1, aw2, ab2, vw1, vb1, vw2, vb2) = params
    h = jnp.maximum(x @ w1 + b1, 0.0)
    adv = jnp.maximum(h @ aw1 + ab1, 0.0) @ aw2 + ab2
    val = jnp.maximum(h @ vw1 + vb1, 0.0) @ vw2 + vb2
    return val + adv - jnp.mean(adv)


if __name__ == "__main__":
    key = jax.random.PRNGKey(0)
    k_x, k_p = jax.random.split(key)

    batch = 8
    in_features = 16      # input_shape = (16,)
    num_actions = 4

    x = jax.random.normal(k_x, (batch, in_features), jnp.float32)
    params = make_params(k_p, in_features, num_actions)
    fused = fuse_params(params, num_actions)

    out = dueling_dqn_forward(x, fused, num_actions=num_actions)
    out = jax.block_until_ready(out)

    assert out.shape == (batch, num_actions)

    ref_bf16 = reference_forward_bf16(x, params)
    assert jnp.allclose(out, ref_bf16, atol=5e-3, rtol=1e-2), "mismatch vs bf16-mirroring reference"

    # Sanity check against the exact f32 PyTorch semantics (bf16 roundoff only).
    ref_f32 = reference_forward_f32(x, params)
    assert jnp.allclose(out, ref_f32, atol=1e-1, rtol=1e-1), "mismatch vs f32 reference"

    print("KERNEL_OK")
</pallas_src>

<mosaic_0001>
module attributes {stable_mosaic.version = 11 : i64} {
  func.func @dueling_dqn_kernel(%arg0: i32, %arg1: memref<8x16xf32, #tpu.memory_space<vmem>>, %arg2: memref<16x128xbf16, #tpu.memory_space<vmem>>, %arg3: memref<1x128xf32, #tpu.memory_space<vmem>>, %arg4: memref<128x1024xbf16, #tpu.memory_space<vmem>>, %arg5: memref<1x1024xf32, #tpu.memory_space<vmem>>, %arg6: memref<1024x128xbf16, #tpu.memory_space<vmem>>, %arg7: memref<1x128xf32, #tpu.memory_space<vmem>>, %arg8: memref<8x128xbf16, #tpu.memory_space<vmem>>) attributes {dimension_semantics = [#tpu.dimension_semantics<parallel>], iteration_bounds = array<i64: 1>, scalar_prefetch = 0 : i64, scratch_operands = 0 : i64, tpu.core_type = #tpu.core_type<tc>, window_params = [{transform_indices = @transform_0, window_bounds = array<i64: 8, 16>}, {pipeline_mode = #tpu.pipeline_mode<synchronous>, transform_indices = @transform_1, window_bounds = array<i64: 16, 128>}, {pipeline_mode = #tpu.pipeline_mode<synchronous>, transform_indices = @transform_2, window_bounds = array<i64: 1, 128>}, {pipeline_mode = #tpu.pipeline_mode<synchronous>, transform_indices = @transform_3, window_bounds = array<i64: 128, 1024>}, {pipeline_mode = #tpu.pipeline_mode<synchronous>, transform_indices = @transform_4, window_bounds = array<i64: 1, 1024>}, {pipeline_mode = #tpu.pipeline_mode<synchronous>, transform_indices = @transform_5, window_bounds = array<i64: 1024, 128>}, {pipeline_mode = #tpu.pipeline_mode<synchronous>, transform_indices = @transform_6, window_bounds = array<i64: 1, 128>}, {transform_indices = @transform_7, window_bounds = array<i64: 8, 128>}]} {
    %c0 = arith.constant 0 : index
    %c0_0 = arith.constant 0 : index
    %0 = vector.load %arg1[%c0, %c0_0] : memref<8x16xf32, #tpu.memory_space<vmem>>, vector<8x16xf32>
    %1 = arith.truncf %0 : vector<8x16xf32> to vector<8x16xbf16>
    %c0_1 = arith.constant 0 : index
    %c0_2 = arith.constant 0 : index
    %2 = vector.load %arg2[%c0_1, %c0_2] : memref<16x128xbf16, #tpu.memory_space<vmem>>, vector<16x128xbf16>
    %cst = arith.constant dense<0.000000e+00> : vector<8x128xf32>
    %3 = tpu.matmul %1, %2, %cst {dimension_numbers = #tpu.dot_dimension_numbers<[1], [0], [0], [1], [0, 0, 1, 1], [], []>} : vector<8x16xbf16>, vector<16x128xbf16>, vector<8x128xf32> -> vector<8x128xf32>
    %c0_3 = arith.constant 0 : index
    %c0_4 = arith.constant 0 : index
    %4 = vector.load %arg3[%c0_3, %c0_4] : memref<1x128xf32, #tpu.memory_space<vmem>>, vector<1x128xf32>
    %5 = vector.broadcast %4 : vector<1x128xf32> to vector<8x128xf32>
    %6 = arith.addf %3, %5 : vector<8x128xf32>
    %cst_5 = arith.constant 0.000000e+00 : f32
    %7 = vector.broadcast %cst_5 : f32 to vector<8x128xf32>
    %8 = arith.maximumf %6, %7 : vector<8x128xf32>
    %9 = arith.truncf %8 : vector<8x128xf32> to vector<8x128xbf16>
    %c0_6 = arith.constant 0 : index
    %c0_7 = arith.constant 0 : index
    %10 = vector.load %arg4[%c0_6, %c0_7] : memref<128x1024xbf16, #tpu.memory_space<vmem>>, vector<128x1024xbf16>
    %cst_8 = arith.constant dense<0.000000e+00> : vector<8x1024xf32>
    %11 = tpu.matmul %9, %10, %cst_8 {dimension_numbers = #tpu.dot_dimension_numbers<[1], [0], [0], [1], [0, 0, 1, 1], [], []>} : vector<8x128xbf16>, vector<128x1024xbf16>, vector<8x1024xf32> -> vector<8x1024xf32>
    %c0_9 = arith.constant 0 : index
    %c0_10 = arith.constant 0 : index
    %12 = vector.load %arg5[%c0_9, %c0_10] : memref<1x1024xf32, #tpu.memory_space<vmem>>, vector<1x1024xf32>
    %13 = vector.broadcast %12 : vector<1x1024xf32> to vector<8x1024xf32>
    %14 = arith.addf %11, %13 : vector<8x1024xf32>
    %cst_11 = arith.constant 0.000000e+00 : f32
    %15 = vector.broadcast %cst_11 : f32 to vector<8x1024xf32>
    %16 = arith.maximumf %14, %15 : vector<8x1024xf32>
    %17 = arith.truncf %16 : vector<8x1024xf32> to vector<8x1024xbf16>
    %c0_12 = arith.constant 0 : index
    %c0_13 = arith.constant 0 : index
    %18 = vector.load %arg6[%c0_12, %c0_13] : memref<1024x128xbf16, #tpu.memory_space<vmem>>, vector<1024x128xbf16>
    %cst_14 = arith.constant dense<0.000000e+00> : vector<8x128xf32>
    %19 = tpu.matmul %17, %18, %cst_14 {dimension_numbers = #tpu.dot_dimension_numbers<[1], [0], [0], [1], [0, 0, 1, 1], [], []>} : vector<8x1024xbf16>, vector<1024x128xbf16>, vector<8x128xf32> -> vector<8x128xf32>
    %c0_15 = arith.constant 0 : index
    %c0_16 = arith.constant 0 : index
    %20 = vector.load %arg7[%c0_15, %c0_16] : memref<1x128xf32, #tpu.memory_space<vmem>>, vector<1x128xf32>
    %21 = vector.broadcast %20 : vector<1x128xf32> to vector<8x128xf32>
    %22 = arith.addf %19, %21 : vector<8x128xf32>
    %23 = arith.truncf %22 : vector<8x128xf32> to vector<8x128xbf16>
    %c0_17 = arith.constant 0 : index
    %c0_18 = arith.constant 0 : index
    %24 = vector.load %arg8[%c0_17, %c0_18] : memref<8x128xbf16, #tpu.memory_space<vmem>>, vector<8x128xbf16>
    tpu.vector_store %arg8[%c0_17, %c0_18], %23 {strides = array<i32>} : memref<8x128xbf16, #tpu.memory_space<vmem>>, vector<8x128xbf16>,
    return
  }
  func.func @transform_0(%arg0: i32) -> (i32, i32) {
    %c0_i32 = arith.constant 0 : i32
    %c0_i32_0 = arith.constant 0 : i32
    return %arg0, %c0_i32 : i32, i32
  }
  func.func @transform_1(%arg0: i32) -> (i32, i32) {
    %c0_i32 = arith.constant 0 : i32
    %c0_i32_0 = arith.constant 0 : i32
    %c0_i32_1 = arith.constant 0 : i32
    return %c0_i32, %c0_i32_0 : i32, i32
  }
  func.func @transform_2(%arg0: i32) -> (i32, i32) {
    %c0_i32 = arith.constant 0 : i32
    %c0_i32_0 = arith.constant 0 : i32
    %c0_i32_1 = arith.constant 0 : i32
    return %c0_i32, %c0_i32_0 : i32, i32
  }
  func.func @transform_3(%arg0: i32) -> (i32, i32) {
    %c0_i32 = arith.constant 0 : i32
    %c0_i32_0 = arith.constant 0 : i32
    %c0_i32_1 = arith.constant 0 : i32
    return %c0_i32, %c0_i32_0 : i32, i32
  }
  func.func @transform_4(%arg0: i32) -> (i32, i32) {
    %c0_i32 = arith.constant 0 : i32
    %c0_i32_0 = arith.constant 0 : i32
    %c0_i32_1 = arith.constant 0 : i32
    return %c0_i32, %c0_i32_0 : i32, i32
  }
  func.func @transform_5(%arg0: i32) -> (i32, i32) {
    %c0_i32 = arith.constant 0 : i32
    %c0_i32_0 = arith.constant 0 : i32
    %c0_i32_1 = arith.constant 0 : i32
    return %c0_i32, %c0_i32_0 : i32, i32
  }
  func.func @transform_6(%arg0: i32) -> (i32, i32) {
    %c0_i32 = arith.constant 0 : i32
    %c0_i32_0 = arith.constant 0 : i32
    %c0_i32_1 = arith.constant 0 : i32
    return %c0_i32, %c0_i32_0 : i32, i32
  }
  func.func @transform_7(%arg0: i32) -> (i32, i32) {
    %c0_i32 = arith.constant 0 : i32
    %c0_i32_0 = arith.constant 0 : i32
    return %arg0, %c0_i32 : i32, i32
  }
}

</mosaic_0001>

<bundles_post_ra>
// kernel: dueling_dqn_forward.1
= control target key start
LH: loop header
LB: loop body
LE: loop exit
PB: predicated region body
PF: predicated region fallthrough
CT: control target
= control target key end

     0   :  { %12 = vsyncpa [#allocation3], 0  ;;  %s1979_s0 = inlined_call_operand.hbm [shape: f32[8,16], index: 0, kind: input, shape index: {}]   ;;  %s1980_s1 = inlined_call_operand.hbm [shape: bf16[16,128], index: 1, kind: input, shape index: {}]   ;;  %s1981_s2 = inlined_call_operand.vmem [shape: f32[1,128], index: 2, kind: input, shape index: {}]   ;;  %s1982_s3 = inlined_call_operand.hbm [shape: bf16[128,1024], index: 3, kind: input, shape index: {}]   ;;  %s1983_s4 = inlined_call_operand.vmem [shape: f32[1,1024], index: 4, kind: input, shape index: {}]   ;;  %s1984_s5 = inlined_call_operand.hbm [shape: bf16[1024,128], index: 5, kind: input, shape index: {}]   ;;  %s1985_s6 = inlined_call_operand.vmem [shape: f32[1,128], index: 6, kind: input, shape index: {}]   ;;  %s1986_s7 = inlined_call_operand.vmem [shape: bf16[8,128], index: 7, kind: output, shape index: {}]  }
   0x1   :  { %13 = vsyncpa [#allocation5], 0 }
   0x2   :  { %14 = vsyncpa [#allocation8], 0  ;;  %s1835_s24 = smov [#allocation4]   ;;  %s1741_s28 = scalar_lea.hbm %s1980_s1, 128 }
   0x3   :  { %s30_s25 = sshll.u32 %s1835_s24, 4  ;;  %p1742_p0 = scmp.ne.s32.totalorder %s1980_s1, %s1741_s28  ;;  %s31_s25 = int_to_ptr.vmem [resolvable:$true] %s30_s25 }
   0x4   :  { %p1745_p1 = scmp.lt.u32.totalorder %s1741_s28, %s1980_s1 }
   0x6   :  { %p1747_p2 = pnand %p1745_p1, %p1742_p0 }
   0x8   :  { %1750 = shalt.err (!%p1747_p2)
}
   0x9   :  { %s1751_s10 = scalar_lea.vmem %s31_s25, 128  ;;  %p1756_p4 = scmp.lt.s32.totalorder %s31_s25, %s31_s25 }
   0xa   :  { %p1752_p3 = scmp.ne.s32.totalorder %s31_s25, %s1751_s10  ;;  %p1757_p5 = scmp.lt.s32.totalorder %s1751_s10, %s1751_s10 }
   0xc   :  { %p1758_p6 = por %p1757_p5, %p1756_p4 }
   0xe   :  { %p1759_p7 = pnand %p1758_p6, %p1752_p3 }
  0x10   :  { %1762 = shalt.err (!%p1759_p7)
}
  0x11   :  { %s1836_s11 = smov 64   ;;  %s1837_s12 = smov 4  }
  0x12   :  { %36 = dma.hbm_to_vmem [thread:$0]  %s1980_s1, 128, %s31_s25, [#allocation5], %s1836_s11, %s1836_s11, %s1837_s12  }
  0x13   :  { %s1838_s15 = smov [#allocation2]   ;;  %s1839_s17 = smov [#allocation6]  }
  0x14   :  { %s21_s16 = sshll.u32 %s1838_s15, 4  ;;  %s44_s18 = sshll.u32 %s1839_s17, 4  ;;  %s22_s16 = int_to_ptr.vmem [resolvable:$true] %s21_s16  ;;  %s45_s18 = int_to_ptr.vmem [resolvable:$true] %s44_s18 }
  0x15   :  { %s1763_s21 = scalar_lea.hbm %s1979_s0, 128 }
  0x16   :  { %p1764_p8 = scmp.ne.s32.totalorder %s1979_s0, %s1763_s21  ;;  %p1767_p9 = scmp.lt.u32.totalorder %s1763_s21, %s1979_s0 }
  0x18   :  { %p1769_p10 = pnand %p1767_p9, %p1764_p8 }
  0x1a   :  { %1772 = shalt.err (!%p1769_p10)
}
  0x1b   :  { %s1773_s1 = scalar_lea.vmem %s22_s16, 128  ;;  %p1778_p12 = scmp.lt.s32.totalorder %s22_s16, %s22_s16 }
  0x1c   :  { %p1774_p11 = scmp.ne.s32.totalorder %s22_s16, %s1773_s1  ;;  %p1779_p13 = scmp.lt.s32.totalorder %s1773_s1, %s1773_s1 }
  0x1e   :  { %p1780_p0 = por %p1779_p13, %p1778_p12 }
  0x20   :  { %p1781_p1 = pnand %p1780_p0, %p1774_p11 }
  0x22   :  { %1784 = shalt.err (!%p1781_p1)
}
  0x23   :  { %24 = dma.hbm_to_vmem [thread:$0]  %s1979_s0, 128, %s22_s16, [#allocation3]  }
  0x24   :  { %s1785_s30 = scalar_lea.hbm %s1982_s3, 8192 }
  0x25   :  { %p1786_p2 = scmp.ne.s32.totalorder %s1982_s3, %s1785_s30  ;;  %p1789_p3 = scmp.lt.u32.totalorder %s1785_s30, %s1982_s3 }
  0x27   :  { %p1791_p4 = pnand %p1789_p3, %p1786_p2 }
  0x29   :  { %1794 = shalt.err (!%p1791_p4)
}
  0x2a   :  { %s1795_s14 = scalar_lea.vmem %s45_s18, 8192  ;;  %p1800_p6 = scmp.lt.s32.totalorder %s45_s18, %s45_s18 }
  0x2b   :  { %p1796_p5 = scmp.ne.s32.totalorder %s45_s18, %s1795_s14  ;;  %p1801_p7 = scmp.lt.s32.totalorder %s1795_s14, %s1795_s14 }
  0x2d   :  { %p1802_p8 = por %p1801_p7, %p1800_p6 }
  0x2f   :  { %p1803_p9 = pnand %p1802_p8, %p1796_p5 }
  0x31   :  { %1806 = shalt.err (!%p1803_p9)
}
  0x32   :  { %s1840_s0 = smov 512   ;;  %s1841_s15 = smov 32  }
  0x33   :  { %50 = dma.hbm_to_vmem [thread:$0]  %s1982_s3, 8192, %s45_s18, [#allocation5], %s1840_s0, %s1840_s0, %s1841_s15  }
  0x34   :  { %s1842_s19 = smov [#allocation7]   ;;  %s1807_s23 = scalar_lea.hbm %s1984_s5, 8192 }
  0x35   :  { %s58_s20 = sshll.u32 %s1842_s19, 4  ;;  %p1808_p10 = scmp.ne.s32.totalorder %s1984_s5, %s1807_s23  ;;  %s59_s20 = int_to_ptr.vmem [resolvable:$true] %s58_s20 }
  0x36   :  { %p1811_p11 = scmp.lt.u32.totalorder %s1807_s23, %s1984_s5 }
  0x38   :  { %p1813_p12 = pnand %p1811_p11, %p1808_p10 }
  0x3a   :  { %1816 = shalt.err (!%p1813_p12)
}
  0x3b   :  { %s1817_s27 = scalar_lea.vmem %s59_s20, 8192  ;;  %p1822_p0 = scmp.lt.s32.totalorder %s59_s20, %s59_s20 }
  0x3c   :  { %p1818_p13 = scmp.ne.s32.totalorder %s59_s20, %s1817_s27  ;;  %p1823_p1 = scmp.lt.s32.totalorder %s1817_s27, %s1817_s27 }
  0x3e   :  { %p1824_p2 = por %p1823_p1, %p1822_p0 }
  0x40   :  { %p1825_p3 = pnand %p1824_p2, %p1818_p13 }
  0x42   :  { %1828 = shalt.err (!%p1825_p3)
}
  0x43   :  { %64 = dma.hbm_to_vmem [thread:$0]  %s1984_s5, 8192, %s59_s20, [#allocation8], %s1836_s11, %s1836_s11, %s1837_s12  }
  0x44   :  { %1829 = dma.done.wait [#allocation3], 128  }
  0x45   :  { %1830 = vsyncadd [#allocation3], 4294967168 }
  0x46   :  { %1831 = dma.done.wait [#allocation5], 8320  }
  0x47   :  { %1832 = vsyncadd [#allocation5], 4294958976 }
  0x48   :  { %1833 = dma.done.wait [#allocation8], 8192  }
  0x49   :  { %1834 = vsyncadd [#allocation8], 4294959104  ;;  %v1843_v0 = vmov 0.0   ;;  %vm1844_vm0 = vmmov 0   ;;  %v1676_v1 = vld [vmem:[#allocation4] sm:$0xff]   ;;  %v80_v2 = vld [vmem:[#allocation2] sm:$0xff] }
  0x4a   :  { %1659 = vmatprep.subr.bf16.mxu0 %v1843_v0  ;;  %1661 = vmatprep.mubr.msk.bf16.mxu0 %vm1844_vm0, %v1843_v0  ;;  %v143_v3 = vld [vmem:[#allocation6] sm:$0xff]  ;;  %v81_v5 = vpack.c.bf16 %v80_v2, %v80_v2  ;;  %vm97_vm1 = vcmask 130048   ;;  %v144_v7 = vld [vmem:[#allocation6 + $0x8] sm:$0xff] }
  0x4b   :  { %v147_v4 = vld [vmem:[#allocation6 + $0x20] sm:$0xff]  ;;  %1660 = vmatpush3.bf16.msra.mxu0 %v1676_v1  ;;  %v148_v8 = vld [vmem:[#allocation6 + $0x28] sm:$0xff] }
  0x4c   :  { %v1441_v6 = vcombine.high %v143_v3, %v147_v4  ;;  %v1440_v9 = vcombine.low %v143_v3, %v147_v4  ;;  %v151_v10 = vld [vmem:[#allocation6 + $0x40] sm:$0xff]  ;;  %v1442_v11 = vcombine.low %v144_v7, %v148_v8  ;;  %v1443_v12 = vcombine.high %v144_v7, %v148_v8  ;;  %v152_v14 = vld [vmem:[#allocation6 + $0x48] sm:$0xff]  ;;  %v145_v4 = vld [vmem:[#allocation6 + $0x10] sm:$0xff] }
  0x4d   :  { %v155_v13 = vld [vmem:[#allocation6 + $0x60] sm:$0xff]  ;;  %v156_v15 = vld [vmem:[#allocation6 + $0x68] sm:$0xff]  ;;  %v150_v8 = vld [vmem:[#allocation6 + $0x38] sm:$0xff] }
  0x4e   :  { %569 = vmatprep.subr.bf16.mxu1 %v1441_v6  ;;  %v1449_v16 = vcombine.high %v151_v10, %v155_v13  ;;  %v1451_v17 = vcombine.high %v152_v14, %v156_v15  ;;  %v159_v18 = vld [vmem:[#allocation6 + $0x80] sm:$0xff]  ;;  %v160_v20 = vld [vmem:[#allocation6 + $0x88] sm:$0xff]  ;;  %1662 = vmatmul.mubr.msk.bf16.vlgmr.msra.gmra.mrb[0].mxu0 %vm97_vm1, %v81_v5  ;;  %v1450_v22 = vcombine.low %v152_v14, %v156_v15  ;;  %v149_v5 = vld [vmem:[#allocation6 + $0x30] sm:$0xff] }
  0x4f   :  { %v163_v19 = vld [vmem:[#allocation6 + $0xa0] sm:$0xff]  ;;  %610 = vmatprep.subr.bf16.mxu0 %v1443_v12  ;;  %v164_v21 = vld [vmem:[#allocation6 + $0xa8] sm:$0xff]  ;;  %570 = vmatpush1.bf16.msra.mxu1 %v1440_v9  ;;  %v1448_v23 = vcombine.low %v151_v10, %v155_v13  ;;  %v146_v6 = vld [vmem:[#allocation6 + $0x18] sm:$0xff]  ;;  %v1445_v7 = vcombine.high %v145_v4, %v149_v5  ;;  %v1444_v9 = vcombine.low %v145_v4, %v149_v5  ;;  %v1845_v12 = vmov 0  }
  0x50   :  { %611 = vmatpush1.bf16.msra.mxu0 %v1442_v11  ;;  %571 = vmatprep.subr.bf16.mxu1 %v1449_v16  ;;  %v1457_v24 = vcombine.high %v159_v18, %v163_v19  ;;  %v1459_v25 = vcombine.high %v160_v20, %v164_v21  ;;  %v167_v26 = vld [vmem:[#allocation6 + $0xc0] sm:$0xff]  ;;  %v168_v28 = vld [vmem:[#allocation6 + $0xc8] sm:$0xff]  ;;  %v1458_v30 = vcombine.low %v160_v20, %v164_v21  ;;  %v154_v20 = vld [vmem:[#allocation6 + $0x58] sm:$0xff] }
  0x51   :  { %612 = vmatprep.subr.bf16.mxu0 %v1451_v17  ;;  %v171_v27 = vld [vmem:[#allocation6 + $0xe0] sm:$0xff]  ;;  %v172_v29 = vld [vmem:[#allocation6 + $0xe8] sm:$0xff]  ;;  %v1456_v31 = vcombine.low %v159_v18, %v163_v19  ;;  %v1446_v10 = vcombine.low %v146_v6, %v150_v8  ;;  %v1447_v11 = vcombine.high %v146_v6, %v150_v8  ;;  %601 = vmatprep.mubr.bf16.mxu1 %v1845_v12  ;;  %v153_v17 = vld [vmem:[#allocation6 + $0x50] sm:$0xff] }
  0x52   :  { %v175_v32 = vld [vmem:[#allocation6 + $0x100] sm:$0xff]  ;;  %v176_v34 = vld [vmem:[#allocation6 + $0x108] sm:$0xff]  ;;  %v1465_v36 = vcombine.high %v167_v26, %v171_v27  ;;  %v1467_v37 = vcombine.high %v168_v28, %v172_v29  ;;  %v1466_v38 = vcombine.low %v168_v28, %v172_v29  ;;  %v1464_v39 = vcombine.low %v167_v26, %v171_v27  ;;  %642 = vmatprep.mubr.bf16.mxu0 %v1845_v12  ;;  %v157_v19 = vld [vmem:[#allocation6 + $0x70] sm:$0xff] }
  0x53   :  { %572 = vmatpush1.bf16.msra.mxu1 %v1448_v23  ;;  %v179_v33 = vld [vmem:[#allocation6 + $0x120] sm:$0xff]  ;;  %v180_v35 = vld [vmem:[#allocation6 + $0x128] sm:$0xff]  ;;  %v158_v21 = vld [vmem:[#allocation6 + $0x78] sm:$0xff] }
  0x54   :  { %613 = vmatpush1.bf16.msra.mxu0 %v1450_v22  ;;  %573 = vmatprep.subr.bf16.mxu1 %v1457_v24  ;;  %v183_v40 = vld [vmem:[#allocation6 + $0x140] sm:$0xff]  ;;  %v184_v42 = vld [vmem:[#allocation6 + $0x148] sm:$0xff]  ;;  %v1473_v44 = vcombine.high %v175_v32, %v179_v33  ;;  %v1475_v45 = vcombine.high %v176_v34, %v180_v35  ;;  %v1474_v46 = vcombine.low %v176_v34, %v180_v35  ;;  %v161_v27 = vld [vmem:[#allocation6 + $0x90] sm:$0xff] }
  0x55   :  { %614 = vmatprep.subr.bf16.mxu0 %v1459_v25  ;;  %v187_v41 = vld [vmem:[#allocation6 + $0x160] sm:$0xff]  ;;  %v188_v43 = vld [vmem:[#allocation6 + $0x168] sm:$0xff]  ;;  %v1472_v47 = vcombine.low %v175_v32, %v179_v33  ;;  %v1453_v25 = vcombine.high %v153_v17, %v157_v19  ;;  %v1455_v26 = vcombine.high %v154_v20, %v158_v21  ;;  %v165_v28 = vld [vmem:[#allocation6 + $0xb0] sm:$0xff]  ;;  %v1454_v32 = vcombine.low %v154_v20, %v158_v21 }
  0x56   :  { %v191_v48 = vld [vmem:[#allocation6 + $0x180] sm:$0xff]  ;;  %v192_v50 = vld [vmem:[#allocation6 + $0x188] sm:$0xff]  ;;  %v1481_v52 = vcombine.high %v183_v40, %v187_v41  ;;  %v1483_v53 = vcombine.high %v184_v42, %v188_v43  ;;  %v1482_v54 = vcombine.low %v184_v42, %v188_v43  ;;  %v1480_v55 = vcombine.low %v183_v40, %v187_v41  ;;  %v162_v29 = vld [vmem:[#allocation6 + $0x98] sm:$0xff] }
  0x57   :  { %574 = vmatpush1.bf16.msra.mxu1 %v1456_v31  ;;  %v195_v49 = vld [vmem:[#allocation6 + $0x1a0] sm:$0xff]  ;;  %v196_v51 = vld [vmem:[#allocation6 + $0x1a8] sm:$0xff]  ;;  %v1452_v31 = vcombine.low %v153_v17, %v157_v19  ;;  %v1461_v33 = vcombine.high %v161_v27, %v165_v28  ;;  %v169_v35 = vld [vmem:[#allocation6 + $0xd0] sm:$0xff] }
  0x58   :  { %615 = vmatpush1.bf16.msra.mxu0 %v1458_v30  ;;  %575 = vmatprep.subr.bf16.mxu1 %v1465_v36  ;;  %v1489_v56 = vcombine.high %v191_v48, %v195_v49  ;;  %v1491_v57 = vcombine.high %v192_v50, %v196_v51  ;;  %v1490_v58 = vcombine.low %v192_v50, %v196_v51  ;;  %v199_v60 = vld [vmem:[#allocation6 + $0x1c0] sm:$0xff]  ;;  %v200_v62 = vld [vmem:[#allocation6 + $0x1c8] sm:$0xff]  ;;  %v166_v30 = vld [vmem:[#allocation6 + $0xb8] sm:$0xff] }
  0x59   :  { %616 = vmatprep.subr.bf16.mxu0 %v1467_v37  ;;  %v1488_v59 = vcombine.low %v191_v48, %v195_v49  ;;  %v203_v61 = vld [vmem:[#allocation6 + $0x1e0] sm:$0xff]  ;;  %v204_v0 = vld [vmem:[#allocation6 + $0x1e8] sm:$0xff]  ;;  %v1463_v34 = vcombine.high %v162_v29, %v166_v30  ;;  %v173_v36 = vld [vmem:[#allocation6 + $0xf0] sm:$0xff]  ;;  %v1462_v40 = vcombine.low %v162_v29, %v166_v30 }
  0x5a   :  { %v1497_v63 = vcombine.high %v199_v60, %v203_v61  ;;  %v1498_v1 = vcombine.low %v200_v62, %v204_v0  ;;  %v1499_v2 = vcombine.high %v200_v62, %v204_v0  ;;  %v1496_v3 = vcombine.low %v199_v60, %v203_v61  ;;  %v1437_v13 = vld [vmem:[%s1981_s2] ss:$0 sm:$0xff]  ;;  %v170_v37 = vld [vmem:[#allocation6 + $0xd8] sm:$0xff]  ;;  %v177_v43 = vld [vmem:[#allocation6 + $0x110] sm:$0xff] }
  0x5b   :  { %576 = vmatpush1.bf16.msra.mxu1 %v1464_v39  ;;  %v1460_v39 = vcombine.low %v161_v27, %v165_v28  ;;  %v1469_v41 = vcombine.high %v169_v35, %v173_v36  ;;  %v185_v51 = vld [vmem:[#allocation6 + $0x150] sm:$0xff]  ;;  %v194_v61 = vld [vmem:[#allocation6 + $0x198] sm:$0xff]  ;;  %v1681_v17 = vld [vmem:[#allocation7 + $0x48] sm:$0xff]  }
  0x5c   :  { %617 = vmatpush1.bf16.msra.mxu0 %v1466_v38  ;;  %577 = vmatprep.subr.bf16.mxu1 %v1473_v44  ;;  %v174_v38 = vld [vmem:[#allocation6 + $0xf8] sm:$0xff]  ;;  %v181_v44 = vld [vmem:[#allocation6 + $0x130] sm:$0xff]  ;;  %v1683_v19 = vld [vmem:[#allocation7 + $0x8] sm:$0xff]  }
  0x5d   :  { %618 = vmatprep.subr.bf16.mxu0 %v1475_v45  ;;  %v1471_v42 = vcombine.high %v170_v37, %v174_v38  ;;  %v178_v45 = vld [vmem:[#allocation6 + $0x118] sm:$0xff]  ;;  %v1470_v48 = vcombine.low %v170_v37, %v174_v38  ;;  %v1477_v49 = vcombine.high %v177_v43, %v181_v44  ;;  %v197_v60 = vld [vmem:[#allocation6 + $0x1b0] sm:$0xff]  ;;  %v1684_v20 = vld [vmem:[#allocation7 + $0x88] sm:$0xff]  }
  0x5e   :  { %v198_v62 = vld [vmem:[#allocation6 + $0x1b8] sm:$0xff]  ;;  %v205_v4 = vld [vmem:[#allocation6 + $0x1f0] sm:$0xff]  ;;  %v1693_v29 = vld [vmem:[#allocation7 + $0x60] sm:$0xff]  }
  0x5f   :  { %578 = vmatpush1.bf16.msra.mxu1 %v1472_v47  ;;  %v1468_v47 = vcombine.low %v169_v35, %v173_v36  ;;  %v202_v5 = vld [vmem:[#allocation6 + $0x1d8] sm:$0xff]  ;;  %v1494_v8 = vcombine.low %v194_v61, %v198_v62  ;;  %v1685_v21 = vld [vmem:[#allocation7 + $0x50] sm:$0xff]   ;;  %v1694_v30 = vld [vmem:[#allocation7 + $0xe0] sm:$0xff]  }
  0x60   :  { %619 = vmatpush1.bf16.msra.mxu0 %v1474_v46  ;;  %579 = vmatprep.subr.bf16.mxu1 %v1481_v52  ;;  %v182_v46 = vld [vmem:[#allocation6 + $0x138] sm:$0xff]  ;;  %v189_v52 = vld [vmem:[#allocation6 + $0x170] sm:$0xff]  ;;  %v1699_v35 = vld [vmem:[#allocation7 + $0x28] sm:$0xff]  }
  0x61   :  { %620 = vmatprep.subr.bf16.mxu0 %v1483_v53  ;;  %v1479_v50 = vcombine.high %v178_v45, %v182_v46  ;;  %v186_v53 = vld [vmem:[#allocation6 + $0x158] sm:$0xff]  ;;  %v1700_v36 = vld [vmem:[#allocation7 + $0xa8] sm:$0xff]   ;;  %v1701_v37 = vld [vmem:[#allocation7 + $0x70] sm:$0xff]  }
  0x62   :  { %v206_v6 = vld [vmem:[#allocation6 + $0x1f8] sm:$0xff]  ;;  %v1702_v38 = vld [vmem:[#allocation7 + $0xf0] sm:$0xff]  }
  0x63   :  { %580 = vmatpush1.bf16.msra.mxu1 %v1480_v55  ;;  %v1476_v55 = vcombine.low %v177_v43, %v181_v44  ;;  %v1690_v27 = vld [vmem:[#allocation7 + $0xd8] sm:$0xff]  }
  0x64   :  { %621 = vmatpush1.bf16.msra.mxu0 %v1482_v54  ;;  %581 = vmatprep.subr.bf16.mxu1 %v1489_v56  ;;  %v190_v54 = vld [vmem:[#allocation6 + $0x178] sm:$0xff]  ;;  %v1478_v56 = vcombine.low %v178_v45, %v182_v46  ;;  %v1709_v45 = vld [vmem:[#allocation7 + $0x140] sm:$0xff]  }
  0x65   :  { %622 = vmatprep.subr.bf16.mxu0 %v1491_v57  ;;  %v1485_v57 = vcombine.high %v185_v51, %v189_v52  ;;  %v1486_v0 = vcombine.low %v186_v53, %v190_v54  ;;  %v1691_v28 = vld [vmem:[#allocation7 + $0x18] sm:$0xff]   ;;  %v1710_v46 = vld [vmem:[#allocation7 + $0x1c0] sm:$0xff]  }
  0x66   :  { %v1707_v43 = vld [vmem:[#allocation7 + $0x38] sm:$0xff]  }
  0x67   :  { %582 = vmatpush1.bf16.msra.mxu1 %v1488_v59  ;;  %v193_v59 = vld [vmem:[#allocation6 + $0x190] sm:$0xff]  ;;  %v1708_v44 = vld [vmem:[#allocation7 + $0xb8] sm:$0xff]  }
  0x68   :  { %623 = vmatpush1.bf16.msra.mxu0 %v1490_v58  ;;  %583 = vmatprep.subr.bf16.mxu1 %v1497_v63  ;;  %v1487_v58 = vcombine.high %v186_v53, %v190_v54  ;;  %v1484_v63 = vcombine.low %v185_v51, %v189_v52  ;;  %v1957_v51 = vld [vmem:[%s1983_s4] sm:$0xff] }
  0x69   :  { %624 = vmatprep.subr.bf16.mxu0 %v1499_v2  ;;  %v1495_v2 = vcombine.high %v194_v61, %v198_v62 }
  0x6b   :  { %584 = vmatpush1.bf16.msra.mxu1 %v1496_v3  ;;  %v201_v3 = vld [vmem:[#allocation6 + $0x1d0] sm:$0xff] }
  0x6c   :  { %625 = vmatpush1.bf16.msra.mxu0 %v1498_v1  ;;  %651 = vmatprep.subr.bf16.mxu1 %v1445_v7  ;;  %v1493_v1 = vcombine.high %v193_v59, %v197_v60  ;;  %v1492_v7 = vcombine.low %v193_v59, %v197_v60 }
  0x6d   :  { %692 = vmatprep.subr.bf16.mxu0 %v1447_v11  ;;  %v1500_v11 = vcombine.low %v201_v3, %v205_v4 }
 0x121   :  { %v135_v14 = vpop.f32.mrb[0].mxu0 }
 0x122   :  { %v136_v15 = vadd.f32 %v1437_v13, %v135_v14  ;;  %v1663_v16 = vpop.f32.mrb[1].mxu0  ;;  %v1677_v13 = vld [vmem:[#allocation7 + $0x40] sm:$0xff]  }
 0x123   :  { %v138_v18 = vpop.f32.mrb[2].mxu0  ;;  %v1678_v14 = vld [vmem:[#allocation7 + $0xc0] sm:$0xff]  }
 0x124   :  { %v141_v22 = vmax.f32 %v136_v15, 0.0  ;;  %v1664_v23 = vpop.f32.mrb[3].mxu0  ;;  %v1679_v15 = vld [vmem:[#allocation7] sm:$0xff]   ;;  %v1682_v18 = vld [vmem:[#allocation7 + $0xc8] sm:$0xff]  }
 0x125   :  { %v1680_v16 = vld [vmem:[#allocation7 + $0x80] sm:$0xff]   ;;  %v1687_v23 = vld [vmem:[#allocation7 + $0x10] sm:$0xff]  }
 0x126   :  { %v1944_v24 = vpack.c.bf16 %v141_v22, %v141_v22  ;;  %v1686_v22 = vld [vmem:[#allocation7 + $0xd0] sm:$0xff]  }
 0x128   :  { %602 = vmatmul.mubr.bf16.vlgmr.msra.gmra.mrb[0].mxu1 %v1944_v24  ;;  %643 = vmatmul.mubr.bf16.vlgmr.msra.gmra.mrb[4].mxu0 %v1944_v24 }
 0x129   :  { %652 = vmatpush1.bf16.msra.mxu1 %v1444_v9  ;;  %693 = vmatpush1.bf16.msra.mxu0 %v1446_v10  ;;  %v1501_v9 = vcombine.high %v201_v3, %v205_v4  ;;  %v1503_v10 = vcombine.high %v202_v5, %v206_v6 }
 0x12a   :  { %653 = vmatprep.subr.bf16.mxu1 %v1453_v25  ;;  %694 = vmatprep.subr.bf16.mxu0 %v1455_v26  ;;  %v1688_v25 = vld [vmem:[#allocation7 + $0x90] sm:$0xff]   ;;  %v1689_v26 = vld [vmem:[#allocation7 + $0x58] sm:$0xff]  }
 0x12b   :  { %683 = vmatprep.mubr.bf16.mxu1 %v1845_v12  ;;  %724 = vmatprep.mubr.bf16.mxu0 %v1845_v12  ;;  %v1502_v12 = vcombine.low %v202_v5, %v206_v6 }
 0x12d   :  { %654 = vmatpush1.bf16.msra.mxu1 %v1452_v31  ;;  %695 = vmatpush1.bf16.msra.mxu0 %v1454_v32  ;;  %v1695_v31 = vld [vmem:[#allocation7 + $0x20] sm:$0xff]  }
 0x12e   :  { %655 = vmatprep.subr.bf16.mxu1 %v1461_v33  ;;  %696 = vmatprep.subr.bf16.mxu0 %v1463_v34  ;;  %v1696_v32 = vld [vmem:[#allocation7 + $0xa0] sm:$0xff]   ;;  %v1697_v33 = vld [vmem:[#allocation7 + $0x68] sm:$0xff]  }
 0x12f   :  { %v1698_v34 = vld [vmem:[#allocation7 + $0xe8] sm:$0xff]  }
 0x131   :  { %656 = vmatpush1.bf16.msra.mxu1 %v1460_v39  ;;  %697 = vmatpush1.bf16.msra.mxu0 %v1462_v40  ;;  %v1703_v39 = vld [vmem:[#allocation7 + $0x30] sm:$0xff]  }
 0x132   :  { %657 = vmatprep.subr.bf16.mxu1 %v1469_v41  ;;  %698 = vmatprep.subr.bf16.mxu0 %v1471_v42  ;;  %v1704_v40 = vld [vmem:[#allocation7 + $0xb0] sm:$0xff]   ;;  %v1705_v41 = vld [vmem:[#allocation7 + $0x78] sm:$0xff]  }
 0x133   :  { %v1706_v42 = vld [vmem:[#allocation7 + $0xf8] sm:$0xff]  }
 0x135   :  { %658 = vmatpush1.bf16.msra.mxu1 %v1468_v47  ;;  %699 = vmatpush1.bf16.msra.mxu0 %v1470_v48  ;;  %v209_v47 = vlaneseq }
 0x136   :  { %659 = vmatprep.subr.bf16.mxu1 %v1477_v49  ;;  %700 = vmatprep.subr.bf16.mxu0 %v1479_v50 }
 0x137   :  { %v1950_v48 = vshrl.u32 %v209_v47, 7  ;;  %v1736_v47 = vld [vmem:[#allocation7 + $0x1b0] sm:$0xff]  }
 0x139   :  { %660 = vmatpush1.bf16.msra.mxu1 %v1476_v55  ;;  %701 = vmatpush1.bf16.msra.mxu0 %v1478_v56  ;;  %v211_v49 = vsub.s32 0, %v1950_v48  ;;  %v219_v50 = vsub.s32 2, %v1950_v48  ;;  %v215_v52 = vsub.s32 1, %v1950_v48  ;;  %v223_v53 = vsub.s32 3, %v1950_v48 }
 0x13a   :  { %661 = vmatprep.subr.bf16.mxu1 %v1485_v57  ;;  %702 = vmatprep.subr.bf16.mxu0 %v1487_v58 }
 0x13b   :  { %v212_v54 = vrot.slane %v1957_v51, %v211_v49  ;;  %v220_v55 = vrot.slane %v1957_v51, %v219_v50  ;;  %v216_v56 = vrot.slane %v1957_v51, %v215_v52  ;;  %v224_v57 = vrot.slane %v1957_v51, %v223_v53  ;;  %v1737_v49 = vld [vmem:[#allocation7 + $0x178] sm:$0xff]  }
 0x13d   :  { %662 = vmatpush1.bf16.msra.mxu1 %v1484_v63  ;;  %703 = vmatpush1.bf16.msra.mxu0 %v1486_v0 }
 0x13e   :  { %663 = vmatprep.subr.bf16.mxu1 %v1493_v1  ;;  %704 = vmatprep.subr.bf16.mxu0 %v1495_v2 }
 0x141   :  { %664 = vmatpush1.bf16.msra.mxu1 %v1492_v7  ;;  %705 = vmatpush1.bf16.msra.mxu0 %v1494_v8 }
 0x142   :  { %665 = vmatprep.subr.bf16.mxu1 %v1501_v9  ;;  %706 = vmatprep.subr.bf16.mxu0 %v1503_v10 }
 0x145   :  { %666 = vmatpush1.bf16.msra.mxu1 %v1500_v11  ;;  %707 = vmatpush1.bf16.msra.mxu0 %v1502_v12  ;;  %v1711_v12 = vld [vmem:[#allocation7 + $0x100] sm:$0xff]  }
 0x146   :  { %1571 = vmatprep.subr.bf16.mxu1 %v1677_v13  ;;  %1593 = vmatprep.subr.bf16.mxu0 %v1678_v14  ;;  %v1712_v13 = vld [vmem:[#allocation7 + $0x180] sm:$0xff]  }
 0x148   :  { %684 = vmatmul.mubr.bf16.vlgmr.msra.gmra.mrb[4].mxu1 %v1944_v24  ;;  %725 = vmatmul.mubr.bf16.vlgmr.msra.gmra.mrb[8].mxu0 %v1944_v24  ;;  %v1692_v24 = vld [vmem:[#allocation7 + $0x98] sm:$0xff]  }
 0x149   :  { %1572 = vmatpush3.bf16.msra.mxu1 %v1679_v15  ;;  %1594 = vmatpush3.bf16.msra.mxu0 %v1680_v16  ;;  %v1713_v16 = vld [vmem:[#allocation7 + $0x148] sm:$0xff]  }
 0x14a   :  { %1573 = vmatprep.subr.bf16.mxu1 %v1681_v17  ;;  %1595 = vmatprep.subr.bf16.mxu0 %v1682_v18  ;;  %v1714_v17 = vld [vmem:[#allocation7 + $0x1c8] sm:$0xff]  }
 0x14b   :  { %v1715_v18 = vld [vmem:[#allocation7 + $0x108] sm:$0xff]  }
 0x14d   :  { %1574 = vmatpush3.bf16.msra.mxu1 %v1683_v19  ;;  %1596 = vmatpush3.bf16.msra.mxu0 %v1684_v20  ;;  %v1716_v19 = vld [vmem:[#allocation7 + $0x188] sm:$0xff]   ;;  %v1717_v20 = vld [vmem:[#allocation7 + $0x150] sm:$0xff]  }
 0x14e   :  { %1575 = vmatprep.subr.bf16.mxu1 %v1685_v21  ;;  %1597 = vmatprep.subr.bf16.mxu0 %v1686_v22  ;;  %v1718_v21 = vld [vmem:[#allocation7 + $0x1d0] sm:$0xff]  }
 0x14f   :  { %v1719_v22 = vld [vmem:[#allocation7 + $0x110] sm:$0xff]  }
 0x151   :  { %1576 = vmatpush3.bf16.msra.mxu1 %v1687_v23  ;;  %1598 = vmatpush3.bf16.msra.mxu0 %v1688_v25  ;;  %v1720_v23 = vld [vmem:[#allocation7 + $0x190] sm:$0xff]   ;;  %v1721_v25 = vld [vmem:[#allocation7 + $0x158] sm:$0xff]  }
 0x152   :  { %1577 = vmatprep.subr.bf16.mxu1 %v1689_v26  ;;  %1599 = vmatprep.subr.bf16.mxu0 %v1690_v27  ;;  %v1722_v26 = vld [vmem:[#allocation7 + $0x1d8] sm:$0xff]  }
 0x153   :  { %v1723_v27 = vld [vmem:[#allocation7 + $0x118] sm:$0xff]  }
 0x155   :  { %1578 = vmatpush3.bf16.msra.mxu1 %v1691_v28  ;;  %1600 = vmatpush3.bf16.msra.mxu0 %v1692_v24  ;;  %v1724_v28 = vld [vmem:[#allocation7 + $0x198] sm:$0xff]   ;;  %v1725_v24 = vld [vmem:[#allocation7 + $0x160] sm:$0xff]  }
 0x156   :  { %1579 = vmatprep.subr.bf16.mxu1 %v1693_v29  ;;  %1601 = vmatprep.subr.bf16.mxu0 %v1694_v30  ;;  %v1726_v29 = vld [vmem:[#allocation7 + $0x1e0] sm:$0xff]  }
 0x157   :  { %v1727_v30 = vld [vmem:[#allocation7 + $0x120] sm:$0xff]  }
 0x159   :  { %1580 = vmatpush3.bf16.msra.mxu1 %v1695_v31  ;;  %1602 = vmatpush3.bf16.msra.mxu0 %v1696_v32  ;;  %v1728_v31 = vld [vmem:[#allocation7 + $0x1a0] sm:$0xff]   ;;  %v1729_v32 = vld [vmem:[#allocation7 + $0x168] sm:$0xff]  }
 0x15a   :  { %1581 = vmatprep.subr.bf16.mxu1 %v1697_v33  ;;  %1603 = vmatprep.subr.bf16.mxu0 %v1698_v34  ;;  %v1730_v33 = vld [vmem:[#allocation7 + $0x1e8] sm:$0xff]   ;;  %v227_v34 = vsub.s32 4, %v1950_v48 }
 0x15d   :  { %1582 = vmatpush3.bf16.msra.mxu1 %v1699_v35  ;;  %1604 = vmatpush3.bf16.msra.mxu0 %v1700_v36  ;;  %v235_v35 = vsub.s32 6, %v1950_v48  ;;  %v1731_v36 = vld [vmem:[#allocation7 + $0x128] sm:$0xff]  }
 0x15e   :  { %1583 = vmatprep.subr.bf16.mxu1 %v1701_v37  ;;  %1605 = vmatprep.subr.bf16.mxu0 %v1702_v38  ;;  %v1732_v37 = vld [vmem:[#allocation7 + $0x1a8] sm:$0xff]   ;;  %v231_v38 = vsub.s32 5, %v1950_v48 }
 0x161   :  { %1584 = vmatpush3.bf16.msra.mxu1 %v1703_v39  ;;  %1606 = vmatpush3.bf16.msra.mxu0 %v1704_v40  ;;  %v239_v39 = vsub.s32 7, %v1950_v48  ;;  %v1733_v40 = vld [vmem:[#allocation7 + $0x170] sm:$0xff]   ;;  %v1738_v48 = vld [vmem:[#allocation7 + $0x1f8] sm:$0xff]  }
 0x162   :  { %1585 = vmatprep.subr.bf16.mxu1 %v1705_v41  ;;  %1607 = vmatprep.subr.bf16.mxu0 %v1706_v42  ;;  %v1734_v41 = vld [vmem:[#allocation7 + $0x1f0] sm:$0xff]   ;;  %v228_v42 = vrot.slane %v1957_v51, %v227_v34 }
 0x165   :  { %1586 = vmatpush3.bf16.msra.mxu1 %v1707_v43  ;;  %1608 = vmatpush3.bf16.msra.mxu0 %v1708_v44  ;;  %v236_v43 = vrot.slane %v1957_v51, %v235_v35  ;;  %v232_v44 = vrot.slane %v1957_v51, %v231_v38 }
 0x166   :  { %1615 = vmatprep.subr.bf16.mxu1 %v1709_v45  ;;  %1637 = vmatprep.subr.bf16.mxu0 %v1710_v46  ;;  %v240_v45 = vrot.slane %v1957_v51, %v239_v39  ;;  %v1735_v46 = vld [vmem:[#allocation7 + $0x130] sm:$0xff]   ;;  %v1740_v51 = vld [vmem:[#allocation7 + $0x1b8] sm:$0xff]  }
 0x1fb   :  { %v603_v58 = vpop.f32.mrb[0].mxu1  ;;  %v644_v59 = vpop.f32.mrb[4].mxu0 }
 0x1fc   :  { %v604_v60 = vadd.f32 %v603_v58, %v212_v54  ;;  %v645_v61 = vadd.f32 %v644_v59, %v220_v55  ;;  %v605_v62 = vpop.f32.mrb[1].mxu1  ;;  %v646_v63 = vpop.f32.mrb[5].mxu0 }
 0x1fd   :  { %v606_v0 = vadd.f32 %v605_v62, %v216_v56  ;;  %v647_v1 = vadd.f32 %v646_v63, %v224_v57  ;;  %v607_v2 = vpop.f32.mrb[2].mxu1  ;;  %v648_v3 = vpop.f32.mrb[6].mxu0 }
 0x1fe   :  { %v733_v4 = vmax.f32 %v604_v60, 0.0  ;;  %v735_v5 = vmax.f32 %v645_v61, 0.0  ;;  %v608_v6 = vpop.f32.mrb[3].mxu1  ;;  %v649_v7 = vpop.f32.mrb[7].mxu0  ;;  %v1739_v61 = vld [vmem:[#allocation7 + $0x138] sm:$0xff]  }
 0x1ff   :  { %v734_v8 = vmax.f32 %v606_v0, 0.0  ;;  %v736_v9 = vmax.f32 %v647_v1, 0.0 }
 0x200   :  { %v741_v14 = vpack.c.bf16 %v733_v4, %v733_v4  ;;  %v743_v15 = vpack.c.bf16 %v735_v5, %v735_v5 }
 0x201   :  { %v742_v10 = vpack.c.bf16 %v734_v8, %v734_v8  ;;  %v744_v11 = vpack.c.bf16 %v736_v9, %v736_v9 }
 0x203   :  { %1300 = vmatprep.mubr.bf16.mxu1 %v742_v10  ;;  %1340 = vmatprep.mubr.bf16.mxu0 %v744_v11  ;;  %v1504_v10 = vld [vmem:[%s1985_s6] ss:$0 sm:$0xff] }
 0x204   :  { %1301 = vmatmul.mubr.bf16.vlgmr.msra.gmra.mrb[8].mxu1 %v741_v14  ;;  %1341 = vmatmul.mubr.bf16.vlgmr.msra.gmra.mrb[12].mxu0 %v743_v15 }
 0x205   :  { %1616 = vmatpush3.bf16.msra.mxu1 %v1711_v12  ;;  %1638 = vmatpush3.bf16.msra.mxu0 %v1712_v13 }
 0x206   :  { %1617 = vmatprep.subr.bf16.mxu1 %v1713_v16  ;;  %1639 = vmatprep.subr.bf16.mxu0 %v1714_v17 }
 0x209   :  { %1618 = vmatpush3.bf16.msra.mxu1 %v1715_v18  ;;  %1640 = vmatpush3.bf16.msra.mxu0 %v1716_v19 }
 0x20a   :  { %1619 = vmatprep.subr.bf16.mxu1 %v1717_v20  ;;  %1641 = vmatprep.subr.bf16.mxu0 %v1718_v21 }
 0x20d   :  { %1620 = vmatpush3.bf16.msra.mxu1 %v1719_v22  ;;  %1642 = vmatpush3.bf16.msra.mxu0 %v1720_v23 }
 0x20e   :  { %1621 = vmatprep.subr.bf16.mxu1 %v1721_v25  ;;  %1643 = vmatprep.subr.bf16.mxu0 %v1722_v26 }
 0x211   :  { %1622 = vmatpush3.bf16.msra.mxu1 %v1723_v27  ;;  %1644 = vmatpush3.bf16.msra.mxu0 %v1724_v28 }
 0x212   :  { %1623 = vmatprep.subr.bf16.mxu1 %v1725_v24  ;;  %1645 = vmatprep.subr.bf16.mxu0 %v1726_v29 }
 0x215   :  { %1624 = vmatpush3.bf16.msra.mxu1 %v1727_v30  ;;  %1646 = vmatpush3.bf16.msra.mxu0 %v1728_v31 }
 0x216   :  { %1625 = vmatprep.subr.bf16.mxu1 %v1729_v32  ;;  %1647 = vmatprep.subr.bf16.mxu0 %v1730_v33 }
 0x219   :  { %1626 = vmatpush3.bf16.msra.mxu1 %v1731_v36  ;;  %1648 = vmatpush3.bf16.msra.mxu0 %v1732_v37 }
 0x21a   :  { %1627 = vmatprep.subr.bf16.mxu1 %v1733_v40  ;;  %1649 = vmatprep.subr.bf16.mxu0 %v1734_v41 }
 0x21b   :  { %v685_v50 = vpop.f32.mrb[4].mxu1  ;;  %v726_v52 = vpop.f32.mrb[8].mxu0 }
 0x21c   :  { %v686_v53 = vadd.f32 %v685_v50, %v228_v42  ;;  %v727_v54 = vadd.f32 %v726_v52, %v236_v43  ;;  %v687_v55 = vpop.f32.mrb[5].mxu1  ;;  %v728_v56 = vpop.f32.mrb[9].mxu0 }
 0x21d   :  { %v688_v57 = vadd.f32 %v687_v55, %v232_v44  ;;  %v729_v58 = vadd.f32 %v728_v56, %v240_v45  ;;  %v689_v59 = vpop.f32.mrb[6].mxu1  ;;  %v730_v60 = vpop.f32.mrb[10].mxu0  ;;  %1628 = vmatpush3.bf16.msra.mxu1 %v1735_v46  ;;  %1650 = vmatpush3.bf16.msra.mxu0 %v1736_v47 }
 0x21e   :  { %v737_v62 = vmax.f32 %v686_v53, 0.0  ;;  %v739_v63 = vmax.f32 %v727_v54, 0.0  ;;  %v690_v0 = vpop.f32.mrb[7].mxu1  ;;  %v731_v1 = vpop.f32.mrb[11].mxu0  ;;  %1629 = vmatprep.subr.bf16.mxu1 %v1737_v49  ;;  %1651 = vmatprep.subr.bf16.mxu0 %v1738_v48 }
 0x21f   :  { %v738_v2 = vmax.f32 %v688_v57, 0.0  ;;  %v740_v3 = vmax.f32 %v729_v58, 0.0 }
 0x220   :  { %v745_v6 = vpack.c.bf16 %v737_v62, %v737_v62  ;;  %v747_v7 = vpack.c.bf16 %v739_v63, %v739_v63 }
 0x221   :  { %v746_v4 = vpack.c.bf16 %v738_v2, %v738_v2  ;;  %v748_v5 = vpack.c.bf16 %v740_v3, %v740_v3  ;;  %1630 = vmatpush3.bf16.msra.mxu1 %v1739_v61  ;;  %1652 = vmatpush3.bf16.msra.mxu0 %v1740_v51 }
 0x223   :  { %1380 = vmatprep.mubr.bf16.mxu1 %v746_v4  ;;  %1420 = vmatprep.mubr.bf16.mxu0 %v748_v5 }
 0x224   :  { %1381 = vmatmul.mubr.bf16.vlgmr.msra.gmra.mrb[12].mxu1 %v745_v6  ;;  %1421 = vmatmul.mubr.bf16.vlgmr.msra.gmra.mrb[16].mxu0 %v747_v7 }
 0x2d7   :  { %v1587_v8 = vpop.f32.mrb[8].mxu1  ;;  %v1609_v9 = vpop.f32.mrb[12].mxu0 }
 0x2d8   :  { %v1588_v11 = vpop.f32.mrb[9].mxu1  ;;  %v1610_v12 = vpop.f32.mrb[13].mxu0 }
 0x2d9   :  { %v1589_v13 = vadd.f32 %v1588_v11, %v1587_v8  ;;  %v1611_v14 = vadd.f32 %v1610_v12, %v1609_v9  ;;  %v1590_v15 = vpop.f32.mrb[10].mxu1  ;;  %v1612_v16 = vpop.f32.mrb[14].mxu0 }
 0x2da   :  { %v1591_v17 = vpop.f32.mrb[11].mxu1  ;;  %v1613_v18 = vpop.f32.mrb[15].mxu0 }
 0x2db   :  { %v1303_v19 = vadd.f32 %v1589_v13, %v1504_v10 }
 0x2dd   :  { %v1343_v20 = vadd.f32 %v1611_v14, %v1303_v19 }
 0x2f7   :  { %v1631_v21 = vpop.f32.mrb[12].mxu1  ;;  %v1653_v22 = vpop.f32.mrb[16].mxu0 }
 0x2f8   :  { %v1632_v23 = vpop.f32.mrb[13].mxu1  ;;  %v1654_v25 = vpop.f32.mrb[17].mxu0 }
 0x2f9   :  { %v1633_v26 = vadd.f32 %v1632_v23, %v1631_v21  ;;  %v1655_v27 = vadd.f32 %v1654_v25, %v1653_v22  ;;  %v1634_v28 = vpop.f32.mrb[14].mxu1  ;;  %v1656_v24 = vpop.f32.mrb[18].mxu0 }
 0x2fa   :  { %v1635_v29 = vpop.f32.mrb[15].mxu1  ;;  %v1657_v30 = vpop.f32.mrb[19].mxu0 }
 0x2fb   :  { %v1383_v31 = vadd.f32 %v1633_v26, %v1343_v20 }
 0x2fd   :  { %v1423_v32 = vadd.f32 %v1655_v27, %v1383_v31 }
 0x2ff   :  { %v1428_v33 = vpack.c.bf16 %v1423_v32, %v1423_v32 }
 0x301   :  { %1429 = vst [vmem:[%s1986_s7] sm:$0xf] %v1428_v33 }
 0x302   :  { %1434 = vsyncpa [#allocation3], 1 }
 0x303   :  { %1435 = vsyncpa [#allocation5], 1 }
 0x304   :  { %1436 = vsyncpa [#allocation8], 1 }

</bundles_post_ra>
